<compile_context>
chip_gen: v7x
topology: tpu7x:2x2x1
jax: 0.10.0
libtpu: 0.0.40
codegen_flags: <defaults>
</compile_context>

<pallas_src>
import jax
import jax.numpy as jnp
from jax.experimental import pallas as pl
from jax.experimental.pallas import tpu as pltpu

BN_EPS = 1e-5
NORM_EPS = 1e-8
LANE = 128


def _round_up(x, m):
    return (x + m - 1) // m * m


def _pad2d(a, rows, cols):
    pr, pc = rows - a.shape[0], cols - a.shape[1]
    if pr == 0 and pc == 0:
        return a
    return jnp.pad(a, ((0, pr), (0, pc)))


def class_block_kernel(x_ref, gamma_ref, beta_ref, w_ref, b_ref,
                       logits_ref, f_ref, f_mxu_ref):
    """Grid axis 0 tiles the class (C) dimension.

    j == 0 : BatchNorm (batch statistics) + L2 row-normalization, written to the
             resident f output block and a bf16 scratch copy for the MXU.
    every j: logits tile = f_mxu @ W_tile + bias_tile  (f32 accumulation).
    """
    j = pl.program_id(0)

    @pl.when(j == 0)
    def _():
        x = x_ref[...].astype(jnp.float32)                 # (N, Dp)
        gamma = gamma_ref[...].astype(jnp.float32)         # (1, Dp)
        beta = beta_ref[...].astype(jnp.float32)           # (1, Dp)

        # --- BatchNorm1d (training-mode batch statistics, biased variance) ---
        mean = jnp.mean(x, axis=0, keepdims=True)
        centered = x - mean
        var = jnp.mean(centered * centered, axis=0, keepdims=True)
        inv_std = jax.lax.rsqrt(var + BN_EPS)
        f = centered * inv_std * gamma + beta              # padded cols: gamma=beta=0 -> f=0

        # --- L2 normalize along dim=1, keepdim, +1e-8 (PyTorch eps placement) ---
        norm = jnp.sqrt(jnp.sum(f * f, axis=1, keepdims=True)) + NORM_EPS
        # One-off divide; exact reciprocal keeps bit-parity with the f32 reference.
        f = f * pl.reciprocal(norm, approx=False)

        f_ref[...] = f.astype(f_ref.dtype)
        f_mxu_ref[...] = f.astype(f_mxu_ref.dtype)

    # --- Classifier: one lane-dense MXU matmul per C tile ---
    logits = jnp.dot(f_mxu_ref[...], w_ref[...], preferred_element_type=jnp.float32)
    logits = logits + b_ref[...].astype(jnp.float32)
    logits_ref[...] = logits.astype(logits_ref.dtype)


def class_block_forward(x, gamma, beta, w_t, b, *, c_tile=256,
                        mxu_dtype=jnp.bfloat16, out_dtype=jnp.float32):
    """x: (N, D); gamma/beta: (1, D); w_t: (D, C) pre-transposed Linear weight; b: (1, C)."""
    n, d = x.shape
    c = w_t.shape[1]

    # Lane-dense padding: D and C up to multiples of 128. N is not padded/tiled because
    # the BN batch statistics reduce over the full batch (block == full array dim is legal).
    dp = _round_up(d, LANE)
    tc = min(_round_up(c_tile, LANE), _round_up(c, LANE))
    cp = _round_up(c, tc)
    num_c_tiles = cp // tc

    xp = _pad2d(x.astype(jnp.float32), n, dp)
    gp = _pad2d(gamma.astype(jnp.float32), 1, dp)   # zero-padded gamma => padded features are 0
    bp = _pad2d(beta.astype(jnp.float32), 1, dp)
    wp = _pad2d(w_t.astype(jnp.float32), dp, cp).astype(mxu_dtype)
    biasp = _pad2d(b.astype(jnp.float32), 1, cp)

    # VMEM budget: double-buffered blocks + scratch + headroom, capped well under
    # v7x's 64 MiB physical VMEM.
    mxu_bytes = jnp.dtype(mxu_dtype).itemsize
    vmem_est = 2 * (n * dp * 4 + 2 * dp * 4 + dp * tc * mxu_bytes
                    + tc * 4 + n * tc * 4 + n * dp * 4) + n * dp * mxu_bytes
    vmem_limit = int(min(max(vmem_est + (4 << 20), 8 << 20), 48 << 20))

    logits_p, f_p = pl.pallas_call(
        class_block_kernel,
        out_shape=(
            jax.ShapeDtypeStruct((n, cp), out_dtype),    # logits (padded C)
            jax.ShapeDtypeStruct((n, dp), out_dtype),    # normalized features (padded D)
        ),
        grid=(num_c_tiles,),
        in_specs=[
            pl.BlockSpec((n, dp), lambda j: (0, 0)),     # x       (resident across C tiles)
            pl.BlockSpec((1, dp), lambda j: (0, 0)),     # gamma   (resident)
            pl.BlockSpec((1, dp), lambda j: (0, 0)),     # beta    (resident)
            pl.BlockSpec((dp, tc), lambda j: (0, j)),    # W tile  (pipelined over C)
            pl.BlockSpec((1, tc), lambda j: (0, j)),     # bias tile
        ],
        out_specs=[
            pl.BlockSpec((n, tc), lambda j: (0, j)),     # logits tile (lane-dense store)
            pl.BlockSpec((n, dp), lambda j: (0, 0)),     # f (resident, written at j == 0)
        ],
        scratch_shapes=[pltpu.VMEM((n, dp), mxu_dtype)], # bf16 copy of f for the MXU
        compiler_params=pltpu.CompilerParams(
            # f output / f_mxu scratch are shared across all C tiles => "arbitrary".
            dimension_semantics=("arbitrary",),
            vmem_limit_bytes=vmem_limit,
        ),
    )(xp, gp, bp, wp, biasp)

    return logits_p[:, :c], f_p[:, :d]


def reference_forward(x, gamma, beta, w_t, b):
    mean = jnp.mean(x, axis=0, keepdims=True)
    centered = x - mean
    var = jnp.mean(centered * centered, axis=0, keepdims=True)
    f = centered * jax.lax.rsqrt(var + BN_EPS) * gamma + beta
    f = f / (jnp.sqrt(jnp.sum(f * f, axis=1, keepdims=True)) + NORM_EPS)
    return f @ w_t + b, f


if __name__ == "__main__":
    # Small, deterministic example: batch=8, input_dim=32, class_num=16.
    N, D, C = 8, 32, 16
    key = jax.random.PRNGKey(0)
    kx, kg, kw = jax.random.split(key, 3)

    x = jax.random.normal(kx, (N, D), dtype=jnp.float32)

    # BatchNorm1d params per weights_init_kaiming: gamma ~ N(1.0, 0.02), beta = 0
    gamma = (1.0 + 0.02 * jax.random.normal(kg, (1, D))).astype(jnp.float32)
    beta = jnp.zeros((1, D), dtype=jnp.float32)

    # Linear params per weights_init_classifier: weight ~ N(0, 0.001), bias = 0.
    # PyTorch Linear weight is (C, D); store transposed (D, C) for the kernel.
    w_t = (0.001 * jax.random.normal(kw, (C, D))).astype(jnp.float32).T
    b = jnp.zeros((1, C), dtype=jnp.float32)

    logits, feats = class_block_forward(x, gamma, beta, w_t, b)
    jax.block_until_ready((logits, feats))

    ref_logits, ref_feats = reference_forward(x, gamma, beta, w_t, b)
    assert logits.shape == (N, C) and feats.shape == (N, D)
    # f is computed entirely in f32 -> tight tolerance.
    assert jnp.allclose(feats, ref_feats, atol=1e-5, rtol=1e-5)
    # The classifier matmul feeds the MXU bf16 operands (f32 accumulation), so compare
    # against the f32 reference with a bf16-appropriate tolerance.
    assert jnp.allclose(logits, ref_logits, atol=5e-5, rtol=5e-2)

    print("KERNEL_OK")
</pallas_src>

<mosaic_0001>
module attributes {stable_mosaic.version = 11 : i64} {
  func.func @class_block_kernel(%arg0: i32, %arg1: memref<8x128xf32, #tpu.memory_space<vmem>>, %arg2: memref<1x128xf32, #tpu.memory_space<vmem>>, %arg3: memref<1x128xf32, #tpu.memory_space<vmem>>, %arg4: memref<128x128xbf16, #tpu.memory_space<vmem>>, %arg5: memref<1x128xf32, #tpu.memory_space<vmem>>, %arg6: memref<8x128xf32, #tpu.memory_space<vmem>>, %arg7: memref<8x128xf32, #tpu.memory_space<vmem>>, %arg8: memref<8x128xbf16, #tpu.memory_space<vmem>>) attributes {dimension_semantics = [#tpu.dimension_semantics<arbitrary>], iteration_bounds = array<i64: 1>, scalar_prefetch = 0 : i64, scratch_operands = 1 : i64, tpu.core_type = #tpu.core_type<tc>, window_params = [{pipeline_mode = #tpu.pipeline_mode<synchronous>, transform_indices = @transform_0, window_bounds = array<i64: 8, 128>}, {pipeline_mode = #tpu.pipeline_mode<synchronous>, transform_indices = @transform_1, window_bounds = array<i64: 1, 128>}, {pipeline_mode = #tpu.pipeline_mode<synchronous>, transform_indices = @transform_2, window_bounds = array<i64: 1, 128>}, {transform_indices = @transform_3, window_bounds = array<i64: 128, 128>}, {transform_indices = @transform_4, window_bounds = array<i64: 1, 128>}, {transform_indices = @transform_5, window_bounds = array<i64: 8, 128>}, {pipeline_mode = #tpu.pipeline_mode<synchronous>, transform_indices = @transform_6, window_bounds = array<i64: 8, 128>}]} {
    %c0_i32 = arith.constant 0 : i32
    %0 = arith.cmpi eq, %arg0, %c0_i32 : i32
    %1 = arith.extui %0 : i1 to i32
    %c0_i32_0 = arith.constant 0 : i32
    %2 = arith.cmpi ne, %1, %c0_i32_0 : i32
    scf.if %2 {
      %c0_8 = arith.constant 0 : index
      %c0_9 = arith.constant 0 : index
      %10 = vector.load %arg1[%c0_8, %c0_9] : memref<8x128xf32, #tpu.memory_space<vmem>>, vector<8x128xf32>
      %c0_10 = arith.constant 0 : index
      %c0_11 = arith.constant 0 : index
      %11 = vector.load %arg2[%c0_10, %c0_11] : memref<1x128xf32, #tpu.memory_space<vmem>>, vector<1x128xf32>
      %c0_12 = arith.constant 0 : index
      %c0_13 = arith.constant 0 : index
      %12 = vector.load %arg3[%c0_12, %c0_13] : memref<1x128xf32, #tpu.memory_space<vmem>>, vector<1x128xf32>
      %cst_14 = arith.constant dense<0.000000e+00> : vector<128xf32>
      %13 = vector.multi_reduction <add>, %10, %cst_14 [0] : vector<8x128xf32> to vector<128xf32>
      %14 = vector.shape_cast %13 : vector<128xf32> to vector<1x128xf32>
      %cst_15 = arith.constant 8.000000e+00 : f32
      %15 = vector.broadcast %cst_15 : f32 to vector<1x128xf32>
      %16 = arith.divf %14, %15 : vector<1x128xf32>
      %17 = vector.broadcast %16 : vector<1x128xf32> to vector<8x128xf32>
      %18 = arith.subf %10, %17 : vector<8x128xf32>
      %19 = arith.mulf %18, %18 : vector<8x128xf32>
      %cst_16 = arith.constant dense<0.000000e+00> : vector<128xf32>
      %20 = vector.multi_reduction <add>, %19, %cst_16 [0] : vector<8x128xf32> to vector<128xf32>
      %21 = vector.shape_cast %20 : vector<128xf32> to vector<1x128xf32>
      %cst_17 = arith.constant 8.000000e+00 : f32
      %22 = vector.broadcast %cst_17 : f32 to vector<1x128xf32>
      %23 = arith.divf %21, %22 : vector<1x128xf32>
      %cst_18 = arith.constant 9.99999974E-6 : f32
      %24 = vector.broadcast %cst_18 : f32 to vector<1x128xf32>
      %25 = arith.addf %23, %24 : vector<1x128xf32>
      %26 = math.rsqrt %25 : vector<1x128xf32>
      %27 = vector.broadcast %26 : vector<1x128xf32> to vector<8x128xf32>
      %28 = arith.mulf %18, %27 : vector<8x128xf32>
      %29 = vector.broadcast %11 : vector<1x128xf32> to vector<8x128xf32>
      %30 = arith.mulf %28, %29 : vector<8x128xf32>
      %31 = vector.broadcast %12 : vector<1x128xf32> to vector<8x128xf32>
      %32 = arith.addf %30, %31 : vector<8x128xf32>
      %33 = arith.mulf %32, %32 : vector<8x128xf32>
      %cst_19 = arith.constant dense<0.000000e+00> : vector<8xf32>
      %34 = vector.multi_reduction <add>, %33, %cst_19 [1] : vector<8x128xf32> to vector<8xf32>
      %35 = vector.shape_cast %34 : vector<8xf32> to vector<8x1xf32>
      %36 = math.sqrt %35 : vector<8x1xf32>
      %cst_20 = arith.constant 9.99999993E-9 : f32
      %37 = vector.broadcast %cst_20 : f32 to vector<8x1xf32>
      %38 = arith.addf %36, %37 : vector<8x1xf32>
      %39 = tpu.reciprocal %38 : vector<8x1xf32> -> vector<8x1xf32>
      %40 = vector.broadcast %39 : vector<8x1xf32> to vector<8x128xf32>
      %41 = arith.mulf %32, %40 : vector<8x128xf32>
      %c0_21 = arith.constant 0 : index
      %c0_22 = arith.constant 0 : index
      %42 = vector.load %arg7[%c0_21, %c0_22] : memref<8x128xf32, #tpu.memory_space<vmem>>, vector<8x128xf32>
      tpu.vector_store %arg7[%c0_21, %c0_22], %41 {strides = array<i32>} : memref<8x128xf32, #tpu.memory_space<vmem>>, vector<8x128xf32>,
      %43 = arith.truncf %41 : vector<8x128xf32> to vector<8x128xbf16>
      %c0_23 = arith.constant 0 : index
      %c0_24 = arith.constant 0 : index
      %44 = vector.load %arg8[%c0_23, %c0_24] : memref<8x128xbf16, #tpu.memory_space<vmem>>, vector<8x128xbf16>
      tpu.vector_store %arg8[%c0_23, %c0_24], %43 {strides = array<i32>} : memref<8x128xbf16, #tpu.memory_space<vmem>>, vector<8x128xbf16>,
    } else {
    }
    %c0 = arith.constant 0 : index
    %c0_1 = arith.constant 0 : index
    %3 = vector.load %arg8[%c0, %c0_1] : memref<8x128xbf16, #tpu.memory_space<vmem>>, vector<8x128xbf16>
    %c0_2 = arith.constant 0 : index
    %c0_3 = arith.constant 0 : index
    %4 = vector.load %arg4[%c0_2, %c0_3] : memref<128x128xbf16, #tpu.memory_space<vmem>>, vector<128x128xbf16>
    %cst = arith.constant dense<0.000000e+00> : vector<8x128xf32>
    %5 = tpu.matmul %3, %4, %cst {dimension_numbers = #tpu.dot_dimension_numbers<[1], [0], [0], [1], [0, 0, 1, 1], [], []>} : vector<8x128xbf16>, vector<128x128xbf16>, vector<8x128xf32> -> vector<8x128xf32>
    %c0_4 = arith.constant 0 : index
    %c0_5 = arith.constant 0 : index
    %6 = vector.load %arg5[%c0_4, %c0_5] : memref<1x128xf32, #tpu.memory_space<vmem>>, vector<1x128xf32>
    %7 = vector.broadcast %6 : vector<1x128xf32> to vector<8x128xf32>
    %8 = arith.addf %5, %7 : vector<8x128xf32>
    %c0_6 = arith.constant 0 : index
    %c0_7 = arith.constant 0 : index
    %9 = vector.load %arg6[%c0_6, %c0_7] : memref<8x128xf32, #tpu.memory_space<vmem>>, vector<8x128xf32>
    tpu.vector_store %arg6[%c0_6, %c0_7], %8 {strides = array<i32>} : memref<8x128xf32, #tpu.memory_space<vmem>>, vector<8x128xf32>,
    return
  }
  func.func @transform_0(%arg0: i32) -> (i32, i32) {
    %c0_i32 = arith.constant 0 : i32
    %c0_i32_0 = arith.constant 0 : i32
    %c0_i32_1 = arith.constant 0 : i32
    return %c0_i32, %c0_i32_0 : i32, i32
  }
  func.func @transform_1(%arg0: i32) -> (i32, i32) {
    %c0_i32 = arith.constant 0 : i32
    %c0_i32_0 = arith.constant 0 : i32
    %c0_i32_1 = arith.constant 0 : i32
    return %c0_i32, %c0_i32_0 : i32, i32
  }
  func.func @transform_2(%arg0: i32) -> (i32, i32) {
    %c0_i32 = arith.constant 0 : i32
    %c0_i32_0 = arith.constant 0 : i32
    %c0_i32_1 = arith.constant 0 : i32
    return %c0_i32, %c0_i32_0 : i32, i32
  }
  func.func @transform_3(%arg0: i32) -> (i32, i32) {
    %c0_i32 = arith.constant 0 : i32
    %c0_i32_0 = arith.constant 0 : i32
    return %c0_i32, %arg0 : i32, i32
  }
  func.func @transform_4(%arg0: i32) -> (i32, i32) {
    %c0_i32 = arith.constant 0 : i32
    %c0_i32_0 = arith.constant 0 : i32
    return %c0_i32, %arg0 : i32, i32
  }
  func.func @transform_5(%arg0: i32) -> (i32, i32) {
    %c0_i32 = arith.constant 0 : i32
    %c0_i32_0 = arith.constant 0 : i32
    return %c0_i32, %arg0 : i32, i32
  }
  func.func @transform_6(%arg0: i32) -> (i32, i32) {
    %c0_i32 = arith.constant 0 : i32
    %c0_i32_0 = arith.constant 0 : i32
    %c0_i32_1 = arith.constant 0 : i32
    return %c0_i32, %c0_i32_0 : i32, i32
  }
}

</mosaic_0001>

<bundles_post_ra>
// kernel: tpu_custom_call.1
= control target key start
LH: loop header
LB: loop body
LE: loop exit
PB: predicated region body
PF: predicated region fallthrough
CT: control target
= control target key end

     0   :  { %12 = vsyncpa [#allocation4], 0  ;;  %s516_s0 = inlined_call_operand.hbm [shape: f32[8,128], index: 0, kind: input, shape index: {}]   ;;  %s517_s1 = inlined_call_operand.vmem [shape: f32[1,128], index: 1, kind: input, shape index: {}]   ;;  %s518_s2 = inlined_call_operand.vmem [shape: f32[1,128], index: 2, kind: input, shape index: {}]   ;;  %s519_s3 = inlined_call_operand.hbm [shape: bf16[128,128], index: 3, kind: input, shape index: {}]   ;;  %s520_s4 = inlined_call_operand.vmem [shape: f32[1,128], index: 4, kind: input, shape index: {}]   ;;  %s521_s5 = inlined_call_operand.hbm [shape: f32[8,128], index: 5, kind: output, shape index: {0}]   ;;  %s522_s6 = inlined_call_operand.hbm [shape: f32[8,128], index: 6, kind: output, shape index: {1}]  }
   0x1   :  { %13 = vsyncpa [#allocation7], 0 }
   0x2   :  { %14 = vsyncpa [#allocation5], 0 }
   0x3   :  { %15 = vsyncpa [#allocation10], 0  ;;  %s409_s21 = smov [#allocation3]   ;;  %s410_s23 = smov [#allocation6]  }
   0x4   :  { %s22_s22 = sshll.u32 %s409_s21, 4  ;;  %s35_s24 = sshll.u32 %s410_s23, 4  ;;  %s23_s22 = int_to_ptr.vmem [resolvable:$true] %s22_s22  ;;  %s452_s24 = int_to_ptr.vmem [resolvable:$true] %s35_s24 }
   0x5   :  { %s313_s27 = scalar_lea.hbm %s516_s0, 128 }
   0x6   :  { %p314_p0 = scmp.ne.s32.totalorder %s516_s0, %s313_s27  ;;  %p317_p1 = scmp.lt.u32.totalorder %s313_s27, %s516_s0 }
   0x8   :  { %p319_p2 = pnand %p317_p1, %p314_p0 }
   0xa   :  { %322 = shalt.err (!%p319_p2)
}
   0xb   :  { %s323_s8 = scalar_lea.vmem %s23_s22, 128  ;;  %p328_p4 = scmp.lt.s32.totalorder %s23_s22, %s23_s22 }
   0xc   :  { %p324_p3 = scmp.ne.s32.totalorder %s23_s22, %s323_s8  ;;  %p329_p5 = scmp.lt.s32.totalorder %s323_s8, %s323_s8 }
   0xe   :  { %p330_p6 = por %p329_p5, %p328_p4 }
  0x10   :  { %p331_p7 = pnand %p330_p6, %p324_p3 }
  0x12   :  { %334 = shalt.err (!%p331_p7)
}
  0x13   :  { %25 = dma.hbm_to_vmem [thread:$0]  %s516_s0, 128, %s23_s22, [#allocation4]  }
  0x14   :  { %s335_s13 = scalar_lea.hbm %s519_s3, 1024 }
  0x15   :  { %p336_p8 = scmp.ne.s32.totalorder %s519_s3, %s335_s13  ;;  %p339_p9 = scmp.lt.u32.totalorder %s335_s13, %s519_s3 }
  0x17   :  { %p341_p10 = pnand %p339_p9, %p336_p8 }
  0x19   :  { %344 = shalt.err (!%p341_p10)
}
  0x1a   :  { %s345_s18 = scalar_lea.vmem %s452_s24, 1024  ;;  %p350_p12 = scmp.lt.s32.totalorder %s452_s24, %s452_s24 }
  0x1b   :  { %p346_p11 = scmp.ne.s32.totalorder %s452_s24, %s345_s18  ;;  %p351_p13 = scmp.lt.s32.totalorder %s345_s18, %s345_s18 }
  0x1d   :  { %p352_p0 = por %p351_p13, %p350_p12 }
  0x1f   :  { %p353_p1 = pnand %p352_p0, %p346_p11 }
  0x21   :  { %356 = shalt.err (!%p353_p1)
}
  0x22   :  { %s411_s0 = smov 64   ;;  %s412_s19 = smov 4  }
  0x23   :  { %41 = dma.hbm_to_vmem [thread:$0]  %s519_s3, 1024, %s452_s24, [#allocation7], %s411_s0, %s411_s0, %s412_s19  }
  0x24   :  { %401 = dma.done.wait [#allocation4], 128  }
  0x25   :  { %402 = vsyncadd [#allocation4], 4294967168 }
  0x26   :  { %403 = dma.done.wait [#allocation7], 1024  }
  0x27   :  { %404 = vsyncadd [#allocation7], 4294966272  ;;  %v55_v0 = vld [vmem:[#allocation3] sm:$0xff]  ;;  %v251_v19 = vld [vmem:[%s517_s1] ss:$0 sm:$0xff]  ;;  %v413_v26 = vmov 0.0  }
  0x28   :  { %v58_v1 = vrot.slane %v55_v0, 4  ;;  %v252_v21 = vld [vmem:[%s518_s2] ss:$0 sm:$0xff]  ;;  %v299_v25 = vld [vmem:[#allocation6] sm:$0xff]   ;;  %271 = vmatprep.subr.bf16.mxu0 %v413_v26  ;;  %v300_v27 = vld [vmem:[#allocation6 + $0x8] sm:$0xff]   ;;  %vm414_vm0 = vmmov 0  }
  0x29   :  { %272 = vmatpush3.bf16.msra.mxu0 %v299_v25  ;;  %v301_v28 = vld [vmem:[#allocation6 + $0x10] sm:$0xff]   ;;  %v302_v29 = vld [vmem:[#allocation6 + $0x18] sm:$0xff]   ;;  %v303_v30 = vld [vmem:[#allocation6 + $0x20] sm:$0xff]   ;;  %287 = vmatprep.mubr.msk.bf16.mxu0 %vm414_vm0, %v413_v26  ;;  %s415_s1 = smov [#allocation9]  }
  0x2a   :  { %v59_v2 = vadd.f32 %v58_v1, %v55_v0  ;;  %273 = vmatprep.subr.bf16.mxu0 %v413_v26  ;;  %v304_v31 = vld [vmem:[#allocation6 + $0x28] sm:$0xff]   ;;  %v305_v32 = vld [vmem:[#allocation6 + $0x30] sm:$0xff]   ;;  %v306_v33 = vld [vmem:[#allocation6 + $0x38] sm:$0xff]   ;;  %s237_s2 = sshll.u32 %s415_s1, 4  ;;  %s238_s2 = int_to_ptr.vmem [resolvable:$true] %s237_s2 }
  0x2b   :  { %s357_s25 = scalar_lea.vmem %s238_s2, 128  ;;  %p362_p3 = scmp.lt.s32.totalorder %s238_s2, %s238_s2 }
  0x2c   :  { %v60_v3 = vrot.slane %v59_v2, 2  ;;  %p358_p2 = scmp.ne.s32.totalorder %s238_s2, %s357_s25  ;;  %p363_p4 = scmp.lt.s32.totalorder %s357_s25, %s357_s25 }
  0x2d   :  { %274 = vmatpush3.bf16.msra.mxu0 %v300_v27 }
  0x2e   :  { %v61_v4 = vadd.f32 %v60_v3, %v59_v2  ;;  %275 = vmatprep.subr.bf16.mxu0 %v413_v26  ;;  %p364_p5 = por %p363_p4, %p362_p3 }
  0x30   :  { %v62_v5 = vrot.slane %v61_v4, 1  ;;  %p365_p6 = pnand %p364_p5, %p358_p2 }
  0x31   :  { %276 = vmatpush3.bf16.msra.mxu0 %v301_v28 }
  0x32   :  { %v63_v6 = vadd.f32 %v62_v5, %v61_v4  ;;  %277 = vmatprep.subr.bf16.mxu0 %v413_v26 }
  0x34   :  { %v65_v7 = vmul.f32 0.125, %v63_v6 }
  0x35   :  { %278 = vmatpush3.bf16.msra.mxu0 %v302_v29 }
  0x36   :  { %v66_v8 = vsub.f32 %v55_v0, %v65_v7  ;;  %279 = vmatprep.subr.bf16.mxu0 %v413_v26 }
  0x38   :  { %v67_v9 = vmul.f32 %v66_v8, %v66_v8 }
  0x39   :  { %280 = vmatpush3.bf16.msra.mxu0 %v303_v30 }
  0x3a   :  { %v68_v10 = vrot.slane %v67_v9, 4  ;;  %281 = vmatprep.subr.bf16.mxu0 %v413_v26 }
  0x3c   :  { %v69_v11 = vadd.f32 %v68_v10, %v67_v9 }
  0x3d   :  { %282 = vmatpush3.bf16.msra.mxu0 %v304_v31 }
  0x3e   :  { %v70_v12 = vrot.slane %v69_v11, 2  ;;  %283 = vmatprep.subr.bf16.mxu0 %v413_v26 }
  0x40   :  { %v71_v13 = vadd.f32 %v70_v12, %v69_v11 }
  0x41   :  { %284 = vmatpush3.bf16.msra.mxu0 %v305_v32 }
  0x42   :  { %v72_v14 = vrot.slane %v71_v13, 1  ;;  %285 = vmatprep.subr.bf16.mxu0 %v413_v26 }
  0x44   :  { %v73_v15 = vadd.f32 %v72_v14, %v71_v13 }
  0x45   :  { %286 = vmatpush3.bf16.msra.mxu0 %v306_v33 }
  0x46   :  { %v74_v16 = vmul.f32 0.125, %v73_v15 }
  0x48   :  { %v75_v17 = vadd.f32 1e-05, %v74_v16 }
  0x4a   :  { %307 = vrsqrt.f32 %v75_v17 }
  0x54   :  { %v308_v18 = vpop.eup %307 }
  0x55   :  { %v77_v20 = vmul.f32 %v308_v18, %v66_v8 }
  0x57   :  { %v84_v22 = vmul.f32 %v251_v19, %v77_v20 }
  0x59   :  { %v91_v23 = vadd.f32 %v252_v21, %v84_v22 }
  0x5b   :  { %v92_v24 = vmul.f32 %v91_v23, %v91_v23 }
  0x5d   :  { %93 = vadd.xlane.f32.xlu0 %v92_v24 }
  0xea   :  { %v94_v34 = vpop.xlane.xlu0 %93 }
  0xeb   :  { %309 = vrsqrt.f32 %v94_v34  ;;  %vm97_vm1 = vcmp.eq.f32.partialorder %v94_v34, inf  ;;  %v100_v37 = vand.u32 2147483648, %v94_v34  ;;  %vm99_vm2 = vcmp.eq.f32.partialorder %v94_v34, 0.0 }
  0xf5   :  { %v310_v35 = vpop.eup %309 }
  0xf6   :  { %v96_v36 = vmul.f32 %v310_v35, %v94_v34 }
  0xf8   :  { %v98_v38 = vsel %vm97_vm1, %v94_v34, %v96_v36 }
  0xf9   :  { %v101_v39 = vsel %vm99_vm2, %v100_v37, %v98_v38 }
  0xfa   :  { %v102_v40 = vadd.f32 1e-08, %v101_v39 }
  0xfc   :  { %311 = vrcp.f32 %v102_v40 }
 0x106   :  { %v312_v41 = vpop.eup %311 }
 0x107   :  { %v104_v42 = vmul.f32 %v312_v41, %v91_v23 }
 0x109   :  { %v106_v43 = vpack.c.bf16 %v104_v42, %v104_v42  ;;  %105 = vst [vmem:[#allocation9] sm:$0xff] %v104_v42 }
 0x10b   :  { %107 = vst [vmem:[#allocation2] sm:$0xf] %v106_v43 }
 0x112   :  { %v108_v44 = vld [vmem:[#allocation2] sm:$0xf] }
 0x113   :  { %288 = vmatmul.mubr.bf16.vlgmr.msra.gmra.mrb[0].mxu0 %v108_v44 }
 0x114   :  { %368 = shalt.err (!%p365_p6)
}
 0x115   :  { %s369_s28 = scalar_lea.hbm %s522_s6, 128 }
 0x116   :  { %p370_p7 = scmp.ne.s32.totalorder %s522_s6, %s369_s28  ;;  %p373_p8 = scmp.lt.u32.totalorder %s369_s28, %s522_s6 }
 0x118   :  { %p375_p9 = pnand %p373_p8, %p370_p7 }
 0x11a   :  { %378 = shalt.err (!%p375_p9)
}
 0x11b   :  { %240 = dma.vmem_to_hbm [thread:$0]  %s238_s2, 128, %s522_s6, [#allocation10]   ;;  %v253_v45 = vld [vmem:[%s520_s4] ss:$0 sm:$0xff] }
 0x11c   :  { %s416_s13 = smov [#allocation8]  }
 0x11d   :  { %s227_s14 = sshll.u32 %s416_s13, 4  ;;  %s228_s14 = int_to_ptr.vmem [resolvable:$true] %s227_s14 }
 0x11e   :  { %s379_s15 = scalar_lea.vmem %s228_s14, 128  ;;  %p384_p11 = scmp.lt.s32.totalorder %s228_s14, %s228_s14 }
 0x11f   :  { %p380_p10 = scmp.ne.s32.totalorder %s228_s14, %s379_s15  ;;  %p385_p12 = scmp.lt.s32.totalorder %s379_s15, %s379_s15 }
 0x121   :  { %p386_p13 = por %p385_p12, %p384_p11 }
 0x123   :  { %p387_p0 = pnand %p386_p13, %p380_p10 }
 0x1e6   :  { %v214_v46 = vpop.f32.mrb[0].mxu0 }
 0x1e7   :  { %v215_v47 = vadd.f32 %v253_v45, %v214_v46  ;;  %v289_v48 = vpop.f32.mrb[1].mxu0 }
 0x1e8   :  { %v217_v49 = vpop.f32.mrb[2].mxu0 }
 0x1e9   :  { %220 = vst [vmem:[#allocation8] sm:$0xff] %v215_v47  ;;  %v290_v50 = vpop.f32.mrb[3].mxu0 }
 0x1ea   :  { %390 = shalt.err (!%p387_p0)
}
 0x1eb   :  { %s391_s4 = scalar_lea.hbm %s521_s5, 128 }
 0x1ec   :  { %p392_p1 = scmp.ne.s32.totalorder %s521_s5, %s391_s4  ;;  %p395_p2 = scmp.lt.u32.totalorder %s391_s4, %s521_s5 }
 0x1ee   :  { %p397_p3 = pnand %p395_p2, %p392_p1 }
 0x1f0   :  { %400 = shalt.err (!%p397_p3)
}
 0x1f1   :  { %230 = dma.vmem_to_hbm [thread:$0]  %s228_s14, 128, %s521_s5, [#allocation5]  }
 0x1f2   :  { %405 = dma.done.wait [#allocation5], 128  }
 0x1f3   :  { %406 = vsyncadd [#allocation5], 4294967168 }
 0x1f4   :  { %407 = dma.done.wait [#allocation10], 128  }
 0x1f5   :  { %408 = vsyncadd [#allocation10], 4294967168 }
 0x1f6   :  { %247 = vsyncpa [#allocation4], 1 }
 0x1f7   :  { %248 = vsyncpa [#allocation7], 1 }
 0x1f8   :  { %249 = vsyncpa [#allocation5], 1 }
 0x1f9   :  { %250 = vsyncpa [#allocation10], 1 }

</bundles_post_ra>
